<compile_context>
chip_gen: v5e
topology: v5e:2x2
jax: 0.10.0
libtpu: 0.0.40
codegen_flags: <defaults>
</compile_context>

<pallas_src>
from functools import partial

import jax
import jax.numpy as jnp
from jax.experimental import pallas as pl
from jax.experimental.pallas import tpu as pltpu

_BN_EPS = 1e-5  # PyTorch BatchNorm2d default.


def _scalar_head_kernel(x_ref, wc_ref, gamma_ref, beta_ref, wfc_ref, sel_ref, o_ref,
                        *, outputs, eps):
    # --- 1x1 conv: per-pixel channel matmul on the MXU (bf16 in, f32 accumulate). ---
    y = jnp.dot(wc_ref[...], x_ref[...], preferred_element_type=jnp.float32)  # (F, N)

    # --- BatchNorm2d (training-mode batch stats) folded into one scale/shift. -------
    # Single pass over the slab: sum(y) and sum(y*y); var = E[y^2] - mean^2 in f32
    # (activations here are near-centered; the clamp guards tiny negative round-off).
    inv_n = 1.0 / y.shape[1]                                           # static scalar
    mean = jnp.sum(y, axis=1, keepdims=True) * inv_n                   # (F, 1)
    ex2 = jnp.sum(y * y, axis=1, keepdims=True) * inv_n                # (F, 1)
    var = jnp.maximum(ex2 - mean * mean, 0.0)                          # biased var
    scale = gamma_ref[...] * jax.lax.rsqrt(var + eps)                  # (F, 1)
    shift = beta_ref[...] - mean * scale                               # (F, 1)
    z = jnp.maximum(y * scale + shift, 0.0)                            # ReLU, (F, N) f32

    # --- FC (no bias).  wfc_ref is (O, F, N): Wfc tiled over batch along lanes. -----
    # Per output o: one VPU multiply applies the (f, s) weights, one MXU matmul
    # against the (N, B) segment selector contracts the lane axis per batch, and a
    # tiny sublane reduce over F finishes.  Static loop over O (O == 1 here).
    for o in range(outputs):
        prod = z * wfc_ref[o].astype(jnp.float32)                      # (F, N)
        m = jnp.dot(prod, sel_ref[...],
                    preferred_element_type=jnp.float32)                # (F, B), MXU
        o_ref[o:o + 1, :] = jnp.sum(m, axis=0, keepdims=True)          # (1, B) direct


def prepare_scalar_head_params(conv_w, bn_gamma, bn_beta, fc_w, *, batch):
    """One-time weight relayout, hoisted out of the per-call path."""
    filters, in_ch = conv_w.shape[0], conv_w.shape[1]
    outputs = fc_w.shape[0]
    spatial = fc_w.shape[1] // filters

    wc = conv_w.reshape(filters, in_ch).astype(jnp.bfloat16)                  # (F, C)
    gamma = bn_gamma.reshape(filters, 1).astype(jnp.float32)                  # (F, 1)
    beta = bn_beta.reshape(filters, 1).astype(jnp.float32)                    # (F, 1)
    # (O, F, S) tiled along the lane axis -> (O, F, B*S): wfc[o, f, b*S + s].
    wfc = jnp.tile(fc_w.reshape(outputs, filters, spatial),
                   (1, 1, batch)).astype(jnp.bfloat16)
    # Segment selector: sel[b*S + s, b] = 1, so `prod @ sel` sums each batch segment.
    sel = jnp.repeat(jnp.eye(batch, dtype=jnp.float32), spatial, axis=0)      # (N, B)
    return wc, gamma, beta, wfc, sel


@jax.jit
def scalar_head_forward(x_nchw, wc, gamma, beta, wfc, sel):
    B, C, H, W = x_nchw.shape
    outputs = wfc.shape[0]
    N = B * H * W
    # Glue: channel-major, batch+spatial flattened on lanes.  (Producing x already in
    # this layout upstream would remove this transpose entirely.)
    x_cn = jnp.transpose(x_nchw, (1, 0, 2, 3)).reshape(C, N).astype(jnp.bfloat16)

    kernel = partial(_scalar_head_kernel, outputs=int(outputs), eps=_BN_EPS)
    vmem = pl.BlockSpec(memory_space=pltpu.MemorySpace.VMEM)
    out_ob = pl.pallas_call(
        kernel,
        out_shape=jax.ShapeDtypeStruct((outputs, B), jnp.float32),
        in_specs=[vmem] * 6,
        out_specs=vmem,
    )(x_cn, wc, gamma, beta, wfc, sel)
    return out_ob.T  # (B, O)


def scalar_head_reference(x, conv_w, bn_gamma, bn_beta, fc_w, eps=_BN_EPS):
    """Pure-JAX f32 reference mirroring the PyTorch forward (training-mode BN)."""
    B, C, H, W = x.shape
    F = conv_w.shape[0]
    y = jnp.einsum("fc,bchw->bfhw", conv_w.reshape(F, C), x)
    mean = jnp.mean(y, axis=(0, 2, 3), keepdims=True)
    var = jnp.mean((y - mean) ** 2, axis=(0, 2, 3), keepdims=True)
    z = (y - mean) / jnp.sqrt(var + eps)
    z = z * bn_gamma.reshape(1, F, 1, 1) + bn_beta.reshape(1, F, 1, 1)
    z = jnp.maximum(z, 0.0)
    return z.reshape(B, -1) @ fc_w.T


if __name__ == "__main__":
    key = jax.random.PRNGKey(0)
    k1, k2, k3, k4, k5 = jax.random.split(key, 5)

    # input_shape = (C, H, W) = (4, 16, 16), filters = 8, outputs = 1
    B, C, H, W = 2, 4, 16, 16
    filters, outputs = 8, 1

    x = jax.random.normal(k1, (B, C, H, W), jnp.float32)
    conv_w = 0.1 * jax.random.normal(k2, (filters, C, 1, 1), jnp.float32)
    bn_gamma = 1.0 + 0.1 * jax.random.normal(k3, (filters,), jnp.float32)
    bn_beta = 0.1 * jax.random.normal(k4, (filters,), jnp.float32)
    fc_w = 0.02 * jax.random.normal(k5, (outputs, filters * H * W), jnp.float32)

    params = prepare_scalar_head_params(conv_w, bn_gamma, bn_beta, fc_w, batch=B)
    out = scalar_head_forward(x, *params)
    out = jax.block_until_ready(out)

    ref = scalar_head_reference(x, conv_w, bn_gamma, bn_beta, fc_w)
    assert out.shape == (B, outputs), out.shape
    # Tolerance sized for bf16 conv/FC operands with f32 accumulation.
    assert jnp.allclose(out, ref, rtol=2e-2, atol=2e-2), (out, ref)
    print("KERNEL_OK")
</pallas_src>

<mosaic_0001>
module attributes {stable_mosaic.version = 11 : i64} {
  func.func @_scalar_head_kernel(%arg0: memref<4x512xbf16, #tpu.memory_space<vmem>>, %arg1: memref<8x4xbf16, #tpu.memory_space<vmem>>, %arg2: memref<8x1xf32, #tpu.memory_space<vmem>>, %arg3: memref<8x1xf32, #tpu.memory_space<vmem>>, %arg4: memref<1x8x512xbf16, #tpu.memory_space<vmem>>, %arg5: memref<512x2xf32, #tpu.memory_space<vmem>>, %arg6: memref<1x2xf32, #tpu.memory_space<vmem>>) attributes {dimension_semantics = [], scalar_prefetch = 0 : i64, scratch_operands = 0 : i64, tpu.core_type = #tpu.core_type<tc>} {
    %c0 = arith.constant 0 : index
    %c0_0 = arith.constant 0 : index
    %0 = vector.load %arg1[%c0, %c0_0] : memref<8x4xbf16, #tpu.memory_space<vmem>>, vector<8x4xbf16>
    %c0_1 = arith.constant 0 : index
    %c0_2 = arith.constant 0 : index
    %1 = vector.load %arg0[%c0_1, %c0_2] : memref<4x512xbf16, #tpu.memory_space<vmem>>, vector<4x512xbf16>
    %cst = arith.constant dense<0.000000e+00> : vector<8x512xf32>
    %2 = tpu.matmul %0, %1, %cst {dimension_numbers = #tpu.dot_dimension_numbers<[1], [0], [0], [1], [0, 0, 1, 1], [], []>} : vector<8x4xbf16>, vector<4x512xbf16>, vector<8x512xf32> -> vector<8x512xf32>
    %cst_3 = arith.constant dense<0.000000e+00> : vector<8xf32>
    %3 = vector.multi_reduction <add>, %2, %cst_3 [1] : vector<8x512xf32> to vector<8xf32>
    %4 = vector.shape_cast %3 : vector<8xf32> to vector<8x1xf32>
    %cst_4 = arith.constant 0.001953125 : f32
    %5 = vector.broadcast %cst_4 : f32 to vector<8x1xf32>
    %6 = arith.mulf %4, %5 : vector<8x1xf32>
    %7 = arith.mulf %2, %2 : vector<8x512xf32>
    %cst_5 = arith.constant dense<0.000000e+00> : vector<8xf32>
    %8 = vector.multi_reduction <add>, %7, %cst_5 [1] : vector<8x512xf32> to vector<8xf32>
    %9 = vector.shape_cast %8 : vector<8xf32> to vector<8x1xf32>
    %cst_6 = arith.constant 0.001953125 : f32
    %10 = vector.broadcast %cst_6 : f32 to vector<8x1xf32>
    %11 = arith.mulf %9, %10 : vector<8x1xf32>
    %12 = arith.mulf %6, %6 : vector<8x1xf32>
    %13 = arith.subf %11, %12 : vector<8x1xf32>
    %cst_7 = arith.constant 0.000000e+00 : f32
    %14 = vector.broadcast %cst_7 : f32 to vector<8x1xf32>
    %15 = arith.maximumf %13, %14 : vector<8x1xf32>
    %c0_8 = arith.constant 0 : index
    %c0_9 = arith.constant 0 : index
    %16 = vector.load %arg2[%c0_8, %c0_9] : memref<8x1xf32, #tpu.memory_space<vmem>>, vector<8x1xf32>
    %cst_10 = arith.constant 9.99999974E-6 : f32
    %17 = vector.broadcast %cst_10 : f32 to vector<8x1xf32>
    %18 = arith.addf %15, %17 : vector<8x1xf32>
    %19 = math.rsqrt %18 : vector<8x1xf32>
    %20 = arith.mulf %16, %19 : vector<8x1xf32>
    %c0_11 = arith.constant 0 : index
    %c0_12 = arith.constant 0 : index
    %21 = vector.load %arg3[%c0_11, %c0_12] : memref<8x1xf32, #tpu.memory_space<vmem>>, vector<8x1xf32>
    %22 = arith.mulf %6, %20 : vector<8x1xf32>
    %23 = arith.subf %21, %22 : vector<8x1xf32>
    %24 = vector.broadcast %20 : vector<8x1xf32> to vector<8x512xf32>
    %25 = arith.mulf %2, %24 : vector<8x512xf32>
    %26 = vector.broadcast %23 : vector<8x1xf32> to vector<8x512xf32>
    %27 = arith.addf %25, %26 : vector<8x512xf32>
    %cst_13 = arith.constant 0.000000e+00 : f32
    %28 = vector.broadcast %cst_13 : f32 to vector<8x512xf32>
    %29 = arith.maximumf %27, %28 : vector<8x512xf32>
    %c0_14 = arith.constant 0 : index
    %c0_15 = arith.constant 0 : index
    %c0_16 = arith.constant 0 : index
    %30 = vector.load %arg4[%c0_14, %c0_15, %c0_16] : memref<1x8x512xbf16, #tpu.memory_space<vmem>>, vector<1x8x512xbf16>
    %31 = vector.shape_cast %30 : vector<1x8x512xbf16> to vector<8x512xbf16>
    %32 = arith.extf %31 : vector<8x512xbf16> to vector<8x512xf32>
    %33 = arith.mulf %29, %32 : vector<8x512xf32>
    %c0_17 = arith.constant 0 : index
    %c0_18 = arith.constant 0 : index
    %34 = vector.load %arg5[%c0_17, %c0_18] : memref<512x2xf32, #tpu.memory_space<vmem>>, vector<512x2xf32>
    %cst_19 = arith.constant dense<0.000000e+00> : vector<8x2xf32>
    %35 = tpu.matmul %33, %34, %cst_19 {dimension_numbers = #tpu.dot_dimension_numbers<[1], [0], [0], [1], [0, 0, 1, 1], [], []>} : vector<8x512xf32>, vector<512x2xf32>, vector<8x2xf32> -> vector<8x2xf32>
    %cst_20 = arith.constant dense<0.000000e+00> : vector<2xf32>
    %36 = vector.multi_reduction <add>, %35, %cst_20 [0] : vector<8x2xf32> to vector<2xf32>
    %37 = vector.shape_cast %36 : vector<2xf32> to vector<1x2xf32>
    %c0_21 = arith.constant 0 : index
    %c0_22 = arith.constant 0 : index
    %38 = vector.load %arg6[%c0_21, %c0_22] : memref<1x2xf32, #tpu.memory_space<vmem>>, vector<1x2xf32>
    tpu.vector_store %arg6[%c0_21, %c0_22], %37 {strides = array<i32>} : memref<1x2xf32, #tpu.memory_space<vmem>>, vector<1x2xf32>,
    return
  }
}

</mosaic_0001>

<bundles_post_ra>
// kernel: scalar_head_forward.1
= control target key start
LH: loop header
LB: loop body
LE: loop exit
PB: predicated region body
PF: predicated region fallthrough
CT: control target
= control target key end

     0   :  { %s655_s0 = inlined_call_operand.vmem [shape: bf16[4,512], index: 0, kind: input, shape index: {}]   ;;  %s656_s1 = inlined_call_operand.vmem [shape: bf16[8,4], index: 1, kind: input, shape index: {}]   ;;  %s657_s2 = inlined_call_operand.vmem [shape: f32[8,1], index: 2, kind: input, shape index: {}]   ;;  %s658_s3 = inlined_call_operand.vmem [shape: f32[8,1], index: 3, kind: input, shape index: {}]   ;;  %s659_s4 = inlined_call_operand.vmem [shape: bf16[1,8,512], index: 4, kind: input, shape index: {}]   ;;  %s660_s5 = inlined_call_operand.vmem [shape: f32[512,2], index: 5, kind: input, shape index: {}]   ;;  %s661_s6 = inlined_call_operand.hbm [shape: f32[1,2], index: 6, kind: output, shape index: {}]  }
   0x1   :  { %v26_v0 = vld [vmem:[%s655_s0] sm:$0xff] }
   0x2   :  { %28 = vst [vmem:[#allocation1] ss:$4 sm:$0xff] %v26_v0 }
   0x3   :  { %11 = vsyncpa [#allocation3], 0  ;;  %vm37_vm0 = vcmask 1041408   ;;  %v25_v3 = vld [vmem:[%s656_s1] sm:$0xf]  ;;  %vm33_vm1 = vcmask 31744  }
   0x4   :  { %v371_v28 = vmov 0   ;;  %v180_v36 = vld [vmem:[%s660_s5 + $0x78] sm:$0xff]  ;;  %v179_v40 = vld [vmem:[%s660_s5 + $0x70] sm:$0xff]  ;;  %v178_v45 = vld [vmem:[%s660_s5 + $0x68] sm:$0xff]  ;;  %vm309_vm5 = vcmask 15360   ;;  %s326_s26 = sshll.u32 %s661_s6, 4  ;;  %s327_s26 = int_to_ptr.hbm [resolvable:$true] %s326_s26 }
   0x5   :  { %341 = vset.pattern.permute.xlu1 %v371_v28  ;;  %342 = vset.pattern.permute.xlu0 %v371_v28  ;;  %v196_v37 = vld [vmem:[%s660_s5 + $0xf8] sm:$0xff]  ;;  %v195_v41 = vld [vmem:[%s660_s5 + $0xf0] sm:$0xff]  ;;  %v194_v46 = vld [vmem:[%s660_s5 + $0xe8] sm:$0xff]  ;;  %vm317_vm6 = vcmask 8192  }
   0x6   :  { %v212_v38 = vld [vmem:[%s660_s5 + $0x178] sm:$0xff]  ;;  %v211_v43 = vld [vmem:[%s660_s5 + $0x170] sm:$0xff]  ;;  %v210_v47 = vld [vmem:[%s660_s5 + $0x168] sm:$0xff] }
   0x7   :  { %v228_v39 = vld [vmem:[%s660_s5 + $0x1f8] sm:$0xff]  ;;  %v227_v44 = vld [vmem:[%s660_s5 + $0x1f0] sm:$0xff]  ;;  %v226_v48 = vld [vmem:[%s660_s5 + $0x1e8] sm:$0xff] }
   0x8   :  { %v177_v49 = vld [vmem:[%s660_s5 + $0x60] sm:$0xff]  ;;  %v176_v53 = vld [vmem:[%s660_s5 + $0x58] sm:$0xff]  ;;  %v175_v57 = vld [vmem:[%s660_s5 + $0x50] sm:$0xff] }
   0x9   :  { %v29_v1 = vld.sshfl [vmem:[#allocation1] sm:$0xff pattern:$0x73625140]  ;;  %v30_v2 = vld.sshfl [vmem:[#allocation1 + $0x8] sm:$0xff pattern:$0x73625140] }
   0xa   :  { %v38_v4 = vsel %vm37_vm0, %v29_v1, 0  ;;  %v40_v5 = vsel %vm37_vm0, %v30_v2, 0  ;;  %v31_v6 = vld.sshfl [vmem:[#allocation1 + $0x10] sm:$0xff pattern:$0x73625140]  ;;  %v193_v50 = vld [vmem:[%s660_s5 + $0xe0] sm:$0xff] }
   0xb   :  { %53 = vmatpush.bf16.msra.mxu0 %v38_v4  ;;  %66 = vmatpush.bf16.msra.mxu1 %v40_v5  ;;  %v42_v7 = vsel %vm37_vm0, %v31_v6, 0  ;;  %v32_v8 = vld.sshfl [vmem:[#allocation1 + $0x18] sm:$0xff pattern:$0x73625140]  ;;  %v209_v51 = vld [vmem:[%s660_s5 + $0x160] sm:$0xff]  ;;  %v191_v58 = vld [vmem:[%s660_s5 + $0xd0] sm:$0xff] }
   0xc   :  { %79 = vmatpush.bf16.msra.mxu2 %v42_v7  ;;  %v44_v9 = vsel %vm37_vm0, %v32_v8, 0  ;;  %v225_v52 = vld [vmem:[%s660_s5 + $0x1e0] sm:$0xff]  ;;  %v192_v54 = vld [vmem:[%s660_s5 + $0xd8] sm:$0xff]  ;;  %v207_v59 = vld [vmem:[%s660_s5 + $0x150] sm:$0xff] }
   0xd   :  { %92 = vmatpush.bf16.msra.mxu3 %v44_v9  ;;  %v208_v55 = vld [vmem:[%s660_s5 + $0x158] sm:$0xff]  ;;  %v223_v60 = vld [vmem:[%s660_s5 + $0x1d0] sm:$0xff]  ;;  %v174_v62 = vld [vmem:[%s660_s5 + $0x48] sm:$0xff] }
   0xe   :  { %335 = vmatmul.msk.bf16.vlgmr.msra.gmra.mxu0 %vm33_vm1, %v25_v3  ;;  %336 = vmatmul.msk.bf16.vlgmr.msra.gmra.mxu1 %vm33_vm1, %v25_v3  ;;  %v224_v56 = vld [vmem:[%s660_s5 + $0x1d8] sm:$0xff]  ;;  %v190_v63 = vld [vmem:[%s660_s5 + $0xc8] sm:$0xff]  ;;  %v189_v4 = vld [vmem:[%s660_s5 + $0xc0] sm:$0xff] }
   0xf   :  { %337 = vmatmul.msk.bf16.vlgmr.msra.gmra.mxu2 %vm33_vm1, %v25_v3  ;;  %229 = vmatpush.msrb.mxu0 %v180_v36  ;;  %v206_v1 = vld [vmem:[%s660_s5 + $0x148] sm:$0xff]  ;;  %v205_v6 = vld [vmem:[%s660_s5 + $0x140] sm:$0xff]  ;;  %v172_v8 = vld [vmem:[%s660_s5 + $0x38] sm:$0xff] }
  0x10   :  { %338 = vmatmul.msk.bf16.vlgmr.msra.gmra.mxu3 %vm33_vm1, %v25_v3  ;;  %249 = vmatpush.msrb.mxu1 %v196_v37  ;;  %v222_v2 = vld [vmem:[%s660_s5 + $0x1c8] sm:$0xff]  ;;  %v173_v3 = vld [vmem:[%s660_s5 + $0x40] sm:$0xff]  ;;  %v188_v9 = vld [vmem:[%s660_s5 + $0xb8] sm:$0xff] }
  0x11   :  { %269 = vmatpush.msrb.mxu2 %v212_v38  ;;  %289 = vmatpush.msrb.mxu3 %v228_v39  ;;  %v221_v7 = vld [vmem:[%s660_s5 + $0x1c0] sm:$0xff]  ;;  %v219_v28 = vld [vmem:[%s660_s5 + $0x1b0] sm:$0xff]  ;;  %v168_v37 = vld [vmem:[%s660_s5 + $0x18] sm:$0xff] }
  0x12   :  { %230 = vmatpush.msrb.mxu0 %v179_v40  ;;  %250 = vmatpush.msrb.mxu1 %v195_v41  ;;  %v217_v36 = vld [vmem:[%s660_s5 + $0x1a0] sm:$0xff]  ;;  %v184_v38 = vld [vmem:[%s660_s5 + $0x98] sm:$0xff]  ;;  %v167_v41 = vld [vmem:[%s660_s5 + $0x10] sm:$0xff] }
  0x13   :  { %270 = vmatpush.msrb.mxu2 %v211_v43  ;;  %290 = vmatpush.msrb.mxu3 %v227_v44  ;;  %v200_v39 = vld [vmem:[%s660_s5 + $0x118] sm:$0xff]  ;;  %v199_v43 = vld [vmem:[%s660_s5 + $0x110] sm:$0xff] }
  0x14   :  { %231 = vmatpush.msrb.mxu0 %v178_v45  ;;  %251 = vmatpush.msrb.mxu1 %v194_v46  ;;  %v216_v40 = vld [vmem:[%s660_s5 + $0x198] sm:$0xff]  ;;  %v215_v44 = vld [vmem:[%s660_s5 + $0x190] sm:$0xff]  ;;  %v166_v45 = vld [vmem:[%s660_s5 + $0x8] sm:$0xff] }
  0x15   :  { %271 = vmatpush.msrb.mxu2 %v210_v47  ;;  %291 = vmatpush.msrb.mxu3 %v226_v48  ;;  %v182_v46 = vld [vmem:[%s660_s5 + $0x88] sm:$0xff] }
  0x16   :  { %232 = vmatpush.msrb.mxu0 %v177_v49  ;;  %252 = vmatpush.msrb.mxu1 %v193_v50  ;;  %v198_v47 = vld [vmem:[%s660_s5 + $0x108] sm:$0xff]  ;;  %v165_v49 = vld [vmem:[%s660_s5] sm:$0xff] }
  0x17   :  { %272 = vmatpush.msrb.mxu2 %v209_v51  ;;  %292 = vmatpush.msrb.mxu3 %v225_v52  ;;  %v214_v48 = vld [vmem:[%s660_s5 + $0x188] sm:$0xff]  ;;  %v181_v50 = vld [vmem:[%s660_s5 + $0x80] sm:$0xff] }
  0x18   :  { %233 = vmatpush.msrb.mxu0 %v176_v53  ;;  %253 = vmatpush.msrb.mxu1 %v192_v54  ;;  %v197_v51 = vld [vmem:[%s660_s5 + $0x100] sm:$0xff] }
  0x19   :  { %273 = vmatpush.msrb.mxu2 %v208_v55  ;;  %293 = vmatpush.msrb.mxu3 %v224_v56  ;;  %v213_v52 = vld [vmem:[%s660_s5 + $0x180] sm:$0xff]  ;;  %v156_v55 = vld [vmem:[%s659_s4 + $0x8] sm:$0xff] }
  0x1a   :  { %234 = vmatpush.msrb.mxu0 %v175_v57  ;;  %254 = vmatpush.msrb.mxu1 %v191_v58  ;;  %v155_v54 = vld [vmem:[%s659_s4] sm:$0xff]  ;;  %s372_s4 = smov [#allocation2]  }
  0x1b   :  { %274 = vmatpush.msrb.mxu2 %v207_v59  ;;  %294 = vmatpush.msrb.mxu3 %v223_v60 }
  0x1c   :  { %235 = vmatpush.msrb.mxu0 %v174_v62  ;;  %255 = vmatpush.msrb.mxu1 %v190_v63  ;;  %v158_v62 = vunpack.c.h.bf16 %v155_v54  ;;  %v159_v63 = vunpack.c.l.bf16 %v156_v55 }
  0x1d   :  { %275 = vmatpush.msrb.mxu2 %v206_v1  ;;  %295 = vmatpush.msrb.mxu3 %v222_v2 }
  0x1e   :  { %236 = vmatpush.msrb.mxu0 %v173_v3  ;;  %256 = vmatpush.msrb.mxu1 %v189_v4 }
  0x1f   :  { %276 = vmatpush.msrb.mxu2 %v205_v6  ;;  %296 = vmatpush.msrb.mxu3 %v221_v7 }
  0x20   :  { %237 = vmatpush.msrb.mxu0 %v172_v8  ;;  %257 = vmatpush.msrb.mxu1 %v188_v9 }
  0x8b   :  { %v414_v10 = vpop.f32.mrf.mxu0  ;;  %v416_v11 = vpop.f32.mrf.mxu1 }
  0x8c   :  { %v98_v12 = vadd.f32 %v416_v11, %v414_v10  ;;  %v104_v13 = vmul.f32 %v414_v10, %v414_v10  ;;  %v105_v14 = vmul.f32 %v416_v11, %v416_v11 }
  0x8e   :  { %v108_v22 = vadd.f32 %v105_v14, %v104_v13  ;;  %v204_v13 = vld [vmem:[%s660_s5 + $0x138] sm:$0xff] }
  0x8f   :  { %v220_v14 = vld [vmem:[%s660_s5 + $0x1b8] sm:$0xff]  ;;  %277 = vmatpush.msrb.mxu2 %v204_v13 }
  0x90   :  { %297 = vmatpush.msrb.mxu3 %v220_v14 }
  0x92   :  { %v424_v15 = vpop.f32.mrf.mxu2  ;;  %298 = vmatpush.msrb.mxu3 %v219_v28 }
  0x93   :  { %v426_v16 = vpop.f32.mrf.mxu3  ;;  %v57_v17 = vpop.f32.mrf.mxu0  ;;  %v99_v18 = vadd.f32 %v98_v12, %v424_v15  ;;  %v106_v20 = vmul.f32 %v424_v15, %v424_v15 }
  0x94   :  { %v70_v19 = vpop.f32.mrf.mxu1  ;;  %v107_v23 = vmul.f32 %v426_v16, %v426_v16 }
  0x95   :  { %v100_v21 = vadd.f32 %v99_v18, %v426_v16  ;;  %v109_v24 = vadd.f32 %v108_v22, %v106_v20  ;;  %v117_v18 = vld [vmem:[%s657_s2] sm:$0xff] }
  0x97   :  { %101 = vadd.xlane.f32.xlu0 %v100_v21  ;;  %v110_v27 = vadd.f32 %v109_v24, %v107_v23  ;;  %v130_v23 = vld [vmem:[%s658_s3] sm:$0xff] }
  0x9a   :  { %v83_v25 = vpop.f32.mrf.mxu2 }
  0x9b   :  { %v96_v26 = vpop.f32.mrf.mxu3  ;;  %v171_v25 = vld [vmem:[%s660_s5 + $0x30] sm:$0xff] }
  0x9c   :  { %v187_v26 = vld [vmem:[%s660_s5 + $0xb0] sm:$0xff]  ;;  %238 = vmatpush.msrb.mxu0 %v171_v25 }
  0x9d   :  { %258 = vmatpush.msrb.mxu1 %v187_v26 }
  0x9f   :  { %111 = vadd.xlane.f32.xlu0 %v110_v27  ;;  %v203_v27 = vld [vmem:[%s660_s5 + $0x130] sm:$0xff] }
  0xa0   :  { %278 = vmatpush.msrb.mxu2 %v203_v27 }
 0x10a   :  { %v102_v29 = vpop.xlane.xlu0 %101 }
 0x10b   :  { %v434_v30 = vmul.f32 0.001953125, %v102_v29  ;;  %v170_v29 = vld [vmem:[%s660_s5 + $0x28] sm:$0xff] }
 0x10c   :  { %239 = vmatpush.msrb.mxu0 %v170_v29 }
 0x10d   :  { %v114_v32 = vmul.f32 %v434_v30, %v434_v30 }
 0x112   :  { %v112_v31 = vpop.xlane.xlu0 %111 }
 0x113   :  { %v113_v33 = vmul.f32 0.001953125, %v112_v31  ;;  %v202_v31 = vld [vmem:[%s660_s5 + $0x128] sm:$0xff] }
 0x114   :  { %279 = vmatpush.msrb.mxu2 %v202_v31 }
 0x115   :  { %v115_v34 = vsub.f32 %v113_v33, %v114_v32  ;;  %v218_v32 = vld [vmem:[%s660_s5 + $0x1a8] sm:$0xff]  ;;  %v169_v33 = vld [vmem:[%s660_s5 + $0x20] sm:$0xff] }
 0x116   :  { %299 = vmatpush.msrb.mxu3 %v218_v32  ;;  %240 = vmatpush.msrb.mxu0 %v169_v33 }
 0x117   :  { %v116_v35 = vmax.f32 %v115_v34, 0.0  ;;  %v185_v34 = vld [vmem:[%s660_s5 + $0xa0] sm:$0xff] }
 0x118   :  { %300 = vmatpush.msrb.mxu3 %v217_v36  ;;  %241 = vmatpush.msrb.mxu0 %v168_v37 }
 0x119   :  { %v456_v42 = vadd.f32 1e-05, %v116_v35  ;;  %v201_v35 = vld [vmem:[%s660_s5 + $0x120] sm:$0xff] }
 0x11a   :  { %280 = vmatpush.msrb.mxu2 %v201_v35  ;;  %301 = vmatpush.msrb.mxu3 %v216_v40 }
 0x11b   :  { %343 = vrsqrt.f32 %v456_v42  ;;  %vm125_vm3 = vweird.f32 %v456_v42  ;;  %242 = vmatpush.msrb.mxu0 %v167_v41 }
 0x11c   :  { %281 = vmatpush.msrb.mxu2 %v200_v39  ;;  %302 = vmatpush.msrb.mxu3 %v215_v44 }
 0x11d   :  { %243 = vmatpush.msrb.mxu0 %v166_v45 }
 0x11e   :  { %282 = vmatpush.msrb.mxu2 %v199_v43  ;;  %303 = vmatpush.msrb.mxu3 %v214_v48 }
 0x11f   :  { %244 = vmatpush.msrb.mxu0 %v165_v49 }
 0x120   :  { %283 = vmatpush.msrb.mxu2 %v198_v47  ;;  %304 = vmatpush.msrb.mxu3 %v213_v52 }
 0x121   :  { %v344_v61 = vpop.eup %343 }
 0x122   :  { %v120_v0 = vmul.f32 %v344_v61, %v456_v42  ;;  %vm126_vm2 = vweird.f32 %v344_v61  ;;  %v183_v42 = vld [vmem:[%s660_s5 + $0x90] sm:$0xff]  ;;  %284 = vmatpush.msrb.mxu2 %v197_v51 }
 0x123   :  { %vm127_vm4 = vmor %vm125_vm3, %vm126_vm2 }
 0x124   :  { %v121_v5 = vmul.f32 %v344_v61, %v120_v0  ;;  %v160_v0 = vunpack.c.h.bf16 %v156_v55 }
 0x126   :  { %v122_v12 = vmul.f32 0.5, %v121_v5 }
 0x128   :  { %v123_v17 = vsub.f32 1.5, %v122_v12 }
 0x12a   :  { %v124_v19 = vmul.f32 %v344_v61, %v123_v17 }
 0x12c   :  { %v128_v20 = vsel %vm127_vm4, %v344_v61, %v124_v19  ;;  %v157_v61 = vunpack.c.l.bf16 %v155_v54 }
 0x12d   :  { %v129_v21 = vmul.f32 %v128_v20, %v117_v18 }
 0x12f   :  { %135 = vperm.xlu1 %341, %v129_v21   ;;  %v131_v22 = vmul.f32 %v129_v21, %v434_v30  ;;  %v186_v30 = vld [vmem:[%s660_s5 + $0xa8] sm:$0xff]  ;;  %s324_s5 = sshll.u32 %s372_s4, 4  ;;  %s325_s5 = int_to_ptr.vmem [resolvable:$true] %s324_s5 }
 0x130   :  { %259 = vmatpush.msrb.mxu1 %v186_v30 }
 0x131   :  { %v132_v24 = vsub.f32 %v130_v23, %v131_v22 }
 0x132   :  { %260 = vmatpush.msrb.mxu1 %v185_v34 }
 0x134   :  { %261 = vmatpush.msrb.mxu1 %v184_v38 }
 0x136   :  { %262 = vmatpush.msrb.mxu1 %v183_v42 }
 0x137   :  { %144 = vperm.xlu1 %341, %v132_v24  }
 0x138   :  { %263 = vmatpush.msrb.mxu1 %v182_v46 }
 0x13a   :  { %264 = vmatpush.msrb.mxu1 %v181_v50 }
 0x1a1   :  { %v136_v53 = vpop.permute.xlu1 %135 }
 0x1a2   :  { %v138_v56 = vmul.f32 %v136_v53, %v414_v10  ;;  %v139_v57 = vmul.f32 %v136_v53, %v416_v11  ;;  %v140_v58 = vmul.f32 %v136_v53, %v424_v15  ;;  %v141_v59 = vmul.f32 %v136_v53, %v426_v16 }
 0x1a9   :  { %v145_v60 = vpop.permute.xlu1 %144 }
 0x1aa   :  { %v147_v1 = vadd.f32 %v145_v60, %v138_v56  ;;  %v148_v2 = vadd.f32 %v145_v60, %v139_v57  ;;  %v149_v3 = vadd.f32 %v145_v60, %v140_v58  ;;  %v150_v4 = vadd.f32 %v145_v60, %v141_v59 }
 0x1ac   :  { %v151_v5 = vmax.f32 %v147_v1, 0.0  ;;  %v152_v6 = vmax.f32 %v148_v2, 0.0  ;;  %v153_v7 = vmax.f32 %v149_v3, 0.0  ;;  %v154_v8 = vmax.f32 %v150_v4, 0.0 }
 0x1ae   :  { %v161_v10 = vmul.f32 %v157_v61, %v151_v5  ;;  %v162_v9 = vmul.f32 %v158_v62, %v152_v6  ;;  %v163_v11 = vmul.f32 %v159_v63, %v153_v7  ;;  %v164_v12 = vmul.f32 %v160_v0, %v154_v8 }
 0x1b0   :  { %245 = vmatmul.f32.vlgmr.msrb.gmra.mxu0 %v161_v10  ;;  %265 = vmatmul.f32.vlgmr.msrb.gmra.mxu1 %v162_v9 }
 0x1b1   :  { %285 = vmatmul.f32.vlgmr.msrb.gmra.mxu2 %v163_v11  ;;  %305 = vmatmul.f32.vlgmr.msrb.gmra.mxu3 %v164_v12 }
 0x22d   :  { %v246_v15 = vpop.f32.mrf.mxu0  ;;  %v266_v16 = vpop.f32.mrf.mxu1 }
 0x22e   :  { %v267_v13 = vadd.f32 %v266_v16, %v246_v15 }
 0x234   :  { %v286_v14 = vpop.f32.mrf.mxu2  ;;  %v306_v18 = vpop.f32.mrf.mxu3 }
 0x235   :  { %v287_v17 = vadd.f32 %v286_v14, %v267_v13 }
 0x237   :  { %v307_v19 = vadd.f32 %v306_v18, %v287_v17 }
 0x239   :  { %v310_v20 = vsel %vm309_vm5, %v307_v19, 0.0 }
 0x23a   :  { %v311_v21 = vrot.slane %v310_v20, 4 }
 0x23c   :  { %v312_v22 = vadd.f32 %v311_v21, %v310_v20 }
 0x23e   :  { %v313_v23 = vrot.slane %v312_v22, 2 }
 0x240   :  { %v314_v24 = vadd.f32 %v313_v23, %v312_v22 }
 0x242   :  { %v315_v25 = vrot.slane %v314_v24, 1 }
 0x244   :  { %v316_v26 = vadd.f32 %v315_v25, %v314_v24 }
 0x246   :  { %318 = vst.msk [vmem:[#allocation2] sm:$0x1] %vm317_vm6, %v316_v26 }
 0x247   :  { %329 = dma.vmem_to_hbm [thread:$0]  %s325_s5, 16, %s327_s26, [#allocation3]  }
 0x248   :  { %369 = dma.done.wait [#allocation3], 16  }
 0x249   :  { %370 = vsyncadd [#allocation3], 4294967280 }
 0x24a   :  { %334 = vsyncpa [#allocation3], 1 }

</bundles_post_ra>
